<compile_context>
chip_gen: v7x
topology: tpu7x:2x2x1
jax: 0.10.0
libtpu: 0.0.40
codegen_flags: <defaults>
</compile_context>

<pallas_src>
import jax
import jax.numpy as jnp
from jax.experimental import pallas as pl
from jax.experimental.pallas import tpu as pltpu


_LANE = 128
_VMEM_TARGET = 24 * 1024 * 1024          # working-set budget (headroom below limit)
_VMEM_LIMIT = 32 * 1024 * 1024           # raise v5e's 16 MiB default; safe on v7x
_RESIDENT_SCALE_LIMIT = 6 * 1024 * 1024  # keep scale VMEM-resident below this


def _round_up(v, mult):
    return ((v + mult - 1) // mult) * mult


def _sublane_align(dtype):
    # f32 -> 8, bf16 -> 16, int8/fp8 -> 32 (sub-32-bit dtypes pack along sublanes).
    return max(8, 32 // jnp.dtype(dtype).itemsize)


def _pad2d(a, rows, cols):
    r, c = a.shape
    if (r, c) == (rows, cols):
        return a
    return jnp.pad(a, ((0, rows - r), (0, cols - c)))


# ---------------------------------------------------------------------------
# Kernels
# ---------------------------------------------------------------------------

def _resident_matmul_kernel(x_ref, s_ref, o_ref):
    # scale block index is constant -> DMA'd once, VMEM-resident; x streamed once.
    o_ref[...] = jnp.dot(
        x_ref[...], s_ref[...], preferred_element_type=jnp.float32
    ).astype(o_ref.dtype)


def _tiled_matmul_kernel_f32(x_ref, s_ref, o_ref):
    # f32 output: accumulate directly into the (K-resident) output block.
    @pl.when(pl.program_id(2) == 0)
    def _():
        o_ref[...] = jnp.zeros_like(o_ref)

    o_ref[...] += jnp.dot(
        x_ref[...], s_ref[...], preferred_element_type=jnp.float32
    )


def _tiled_matmul_kernel_acc(x_ref, s_ref, o_ref, acc_ref):
    kk = pl.program_id(2)

    @pl.when(kk == 0)
    def _():
        acc_ref[...] = jnp.zeros_like(acc_ref)

    acc_ref[...] += jnp.dot(
        x_ref[...], s_ref[...], preferred_element_type=jnp.float32
    )

    @pl.when(kk == pl.num_programs(2) - 1)
    def _():
        o_ref[...] = acc_ref[...].astype(o_ref.dtype)


def _matvec_kernel(x_ref, s_ref, o_ref, acc_ref):
    # VPU multiply + lane reduction; avoids a degenerate N=1 MXU matmul.
    kk = pl.program_id(1)

    @pl.when(kk == 0)
    def _():
        acc_ref[...] = jnp.zeros_like(acc_ref)

    prod = x_ref[...].astype(jnp.float32) * s_ref[...].astype(jnp.float32)
    acc_ref[...] += jnp.sum(prod, axis=-1, keepdims=True)

    @pl.when(kk == pl.num_programs(1) - 1)
    def _():
        o_ref[...] = acc_ref[...].astype(o_ref.dtype)


# ---------------------------------------------------------------------------
# Tile selection
# ---------------------------------------------------------------------------

def _fit_tiles(m, k, n, xi, si, oi, align_m, need_scratch):
    tm = min(_round_up(m, align_m), 512)
    tk = min(_round_up(k, _LANE), 1024)
    tn = min(_round_up(n, _LANE), 1024)

    def vmem_bytes(tm_, tk_, tn_):
        b = 2 * (tm_ * tk_ * xi + tk_ * tn_ * si + tm_ * tn_ * oi)
        if need_scratch:
            b += tm_ * tn_ * 4
        return b

    while vmem_bytes(tm, tk, tn) > _VMEM_TARGET:
        if tn >= tk and tn > _LANE:
            tn = _round_up(tn // 2, _LANE)
        elif tk > _LANE:
            tk = _round_up(tk // 2, _LANE)
        elif tn > _LANE:
            tn = _round_up(tn // 2, _LANE)
        elif tm > align_m:
            tm = _round_up(tm // 2, align_m)
        else:
            break
    return tm, tk, tn


# ---------------------------------------------------------------------------
# Dispatch paths
# ---------------------------------------------------------------------------

def _matmul2d(x, scale, m, k, n, out_dtype, align_m):
    xi = jnp.dtype(x.dtype).itemsize
    si = jnp.dtype(scale.dtype).itemsize
    oi = jnp.dtype(out_dtype).itemsize

    k_pad = _round_up(k, _LANE)
    n_pad = _round_up(n, _LANE)
    scale_bytes = k_pad * n_pad * si

    cost = pl.CostEstimate(
        flops=2 * m * n * k,
        transcendentals=0,
        bytes_accessed=m * k * xi + k * n * si + m * n * oi,
    )

    if scale_bytes <= _RESIDENT_SCALE_LIMIT:
        # -- Resident-scale path: 1-D grid over M, scale DMA'd once. --
        per_row = 2 * (k_pad * xi + n_pad * oi)      # double-buffered x + out rows
        budget_rows = max(align_m,
                          ((_VMEM_TARGET - 2 * scale_bytes) // per_row)
                          // align_m * align_m)
        tm = min(budget_rows, _round_up(m, align_m), 1024)
        # Megacore: if M is big enough but would be a single tile, split it.
        if tm >= _round_up(m, align_m) and m > align_m:
            tm = _round_up(-(-m // 2), align_m)
        m_pad = _round_up(m, tm)

        x_p = _pad2d(x, m_pad, k_pad)
        s_p = _pad2d(scale, k_pad, n_pad)

        out = pl.pallas_call(
            _resident_matmul_kernel,
            out_shape=jax.ShapeDtypeStruct((m_pad, n_pad), out_dtype),
            grid_spec=pltpu.PrefetchScalarGridSpec(
                num_scalar_prefetch=0,
                grid=(m_pad // tm,),
                in_specs=[
                    pl.BlockSpec((tm, k_pad), lambda i: (i, 0)),
                    pl.BlockSpec((k_pad, n_pad), lambda i: (0, 0)),
                ],
                out_specs=pl.BlockSpec((tm, n_pad), lambda i: (i, 0)),
            ),
            compiler_params=pltpu.CompilerParams(
                dimension_semantics=("parallel",),
                vmem_limit_bytes=_VMEM_LIMIT,
            ),
            cost_estimate=cost,
        )(x_p, s_p)
        return out[:m, :n]

    # -- General tiled path (large scale): 3-D grid, K reduction last. --
    need_scratch = jnp.dtype(out_dtype) != jnp.dtype(jnp.float32)
    tm, tk, tn = _fit_tiles(m, k, n, xi, si, oi, align_m, need_scratch)
    m_pad = _round_up(m, tm)
    k_pad = _round_up(k, tk)
    n_pad = _round_up(n, tn)

    x_p = _pad2d(x, m_pad, k_pad)
    s_p = _pad2d(scale, k_pad, n_pad)

    kernel = _tiled_matmul_kernel_acc if need_scratch else _tiled_matmul_kernel_f32
    scratch = [pltpu.VMEM((tm, tn), jnp.float32)] if need_scratch else []

    out = pl.pallas_call(
        kernel,
        out_shape=jax.ShapeDtypeStruct((m_pad, n_pad), out_dtype),
        grid_spec=pltpu.PrefetchScalarGridSpec(
            num_scalar_prefetch=0,
            grid=(m_pad // tm, n_pad // tn, k_pad // tk),
            in_specs=[
                pl.BlockSpec((tm, tk), lambda i, j, kk: (i, kk)),
                pl.BlockSpec((tk, tn), lambda i, j, kk: (kk, j)),
            ],
            out_specs=pl.BlockSpec((tm, tn), lambda i, j, kk: (i, j)),
            scratch_shapes=scratch,
        ),
        compiler_params=pltpu.CompilerParams(
            dimension_semantics=("parallel", "parallel", "arbitrary"),
            vmem_limit_bytes=_VMEM_LIMIT,
        ),
        cost_estimate=cost,
    )(x_p, s_p)
    return out[:m, :n]


def _matvec(x, scale, m, k, out_dtype, align_m):
    xi = jnp.dtype(x.dtype).itemsize
    si = jnp.dtype(scale.dtype).itemsize

    tk = min(_round_up(k, _LANE), 2048)          # wide x tiles keep HBM reads dense
    k_pad = _round_up(k, tk)
    per_row = 2 * tk * xi
    tm = max(align_m, ((_VMEM_TARGET // per_row) // align_m) * align_m)
    tm = min(tm, _round_up(m, align_m), 1024)
    if tm >= _round_up(m, align_m) and m > align_m:
        tm = _round_up(-(-m // 2), align_m)      # split M so both TCs get work
    m_pad = _round_up(m, tm)

    x_p = _pad2d(x, m_pad, k_pad)
    s_row = scale if k_pad == k else jnp.pad(scale, (0, k_pad - k))
    s_row = s_row.reshape(1, k_pad)

    out = pl.pallas_call(
        _matvec_kernel,
        out_shape=jax.ShapeDtypeStruct((m_pad, 1), out_dtype),
        grid_spec=pltpu.PrefetchScalarGridSpec(
            num_scalar_prefetch=0,
            grid=(m_pad // tm, k_pad // tk),
            in_specs=[
                pl.BlockSpec((tm, tk), lambda i, kk: (i, kk)),
                pl.BlockSpec((1, tk), lambda i, kk: (0, kk)),
            ],
            out_specs=pl.BlockSpec((tm, 1), lambda i, kk: (i, 0)),
            scratch_shapes=[pltpu.VMEM((tm, 1), jnp.float32)],
        ),
        compiler_params=pltpu.CompilerParams(
            dimension_semantics=("parallel", "arbitrary"),
            vmem_limit_bytes=_VMEM_LIMIT,
        ),
        cost_estimate=pl.CostEstimate(
            flops=2 * m * k,
            transcendentals=0,
            bytes_accessed=m * k * xi + k * si + m * jnp.dtype(out_dtype).itemsize,
        ),
    )(x_p, s_row)
    return out[:m, 0]


# ---------------------------------------------------------------------------
# Public wrapper (forward of ScaleLayer1d)
# ---------------------------------------------------------------------------

def scale_layer_1d(x, scale, *, allow_bf16=False):
    """Forward of ScaleLayer1d: y = x @ scale (torch.matmul semantics)."""
    x = jnp.asarray(x)
    scale = jnp.asarray(scale)
    assert scale.ndim in (1, 2), "ScaleLayer1d expects a 1-D or 2-D scale tensor"
    # TODO(synk): scale tensors with >2 dims (batched-matmul scale) not supported.

    out_dtype = jnp.result_type(x.dtype, scale.dtype)

    # Flatten leading batch dims of x (torch.matmul broadcasting over 1-/2-D scale).
    x_lead = None
    if x.ndim == 1:
        x2 = x[None, :]
    else:
        x_lead = x.shape[:-1]
        x2 = x.reshape(-1, x.shape[-1])

    if allow_bf16 and jnp.issubdtype(x.dtype, jnp.floating) and \
            jnp.issubdtype(scale.dtype, jnp.floating):
        x2 = x2.astype(jnp.bfloat16)
        scale = scale.astype(jnp.bfloat16)

    matvec = scale.ndim == 1
    m, k = x2.shape
    assert k == scale.shape[0], f"inner dimension mismatch: {k} vs {scale.shape[0]}"
    align_m = _sublane_align(x2.dtype)

    if matvec:
        out2 = _matvec(x2, scale, m, k, out_dtype, align_m)          # (m,)
    else:
        n = scale.shape[1]
        out2 = _matmul2d(x2, scale, m, k, n, out_dtype, align_m)     # (m, n)

    if x_lead is None:                 # original x was 1-D
        return out2[0]
    if matvec:
        return out2.reshape(x_lead)
    return out2.reshape(x_lead + (scale.shape[1],))


if __name__ == "__main__":
    key = jax.random.PRNGKey(0)
    k1, k2, k3 = jax.random.split(key, 3)

    batch, hidden = 8, 32

    # Case 1: 2-D scale matrix (hidden, hidden) -> (batch, hidden).
    x = jax.random.normal(k1, (batch, hidden), dtype=jnp.float32)
    scale_mat = jax.random.normal(k2, (hidden, hidden), dtype=jnp.float32)
    y = scale_layer_1d(x, scale_mat)
    jax.block_until_ready(y)
    ref = jnp.matmul(x, scale_mat)
    assert y.shape == ref.shape and y.dtype == ref.dtype
    assert bool(jnp.allclose(y, ref, atol=1e-4, rtol=1e-4))

    # Case 2: 1-D scale vector (hidden,) -> (batch,)  (matvec path).
    scale_vec = jax.random.normal(k3, (hidden,), dtype=jnp.float32)
    y1 = scale_layer_1d(x, scale_vec)
    jax.block_until_ready(y1)
    ref1 = jnp.matmul(x, scale_vec)
    assert y1.shape == ref1.shape
    assert bool(jnp.allclose(y1, ref1, atol=1e-4, rtol=1e-4))

    # Case 3: batched 3-D input -> leading dims flattened then restored.
    x3 = jax.random.normal(k1, (2, 4, hidden), dtype=jnp.float32)
    y3 = scale_layer_1d(x3, scale_mat)
    jax.block_until_ready(y3)
    ref3 = jnp.matmul(x3, scale_mat)
    assert y3.shape == ref3.shape
    assert bool(jnp.allclose(y3, ref3, atol=1e-4, rtol=1e-4))

    print("KERNEL_OK")
</pallas_src>

<mosaic_0001>
module attributes {stable_mosaic.version = 11 : i64} {
  func.func @_resident_matmul_kernel(%arg0: i32, %arg1: memref<8x128xf32, #tpu.memory_space<vmem>>, %arg2: memref<128x128xf32, #tpu.memory_space<vmem>>, %arg3: memref<8x128xf32, #tpu.memory_space<vmem>>) attributes {dimension_semantics = [#tpu.dimension_semantics<parallel>], iteration_bounds = array<i64: 1>, scalar_prefetch = 0 : i64, scratch_operands = 0 : i64, tpu.core_type = #tpu.core_type<tc>, window_params = [{transform_indices = @transform_0, window_bounds = array<i64: 8, 128>}, {pipeline_mode = #tpu.pipeline_mode<synchronous>, transform_indices = @transform_1, window_bounds = array<i64: 128, 128>}, {transform_indices = @transform_2, window_bounds = array<i64: 8, 128>}]} {
    %c0 = arith.constant 0 : index
    %c0_0 = arith.constant 0 : index
    %0 = vector.load %arg1[%c0, %c0_0] : memref<8x128xf32, #tpu.memory_space<vmem>>, vector<8x128xf32>
    %c0_1 = arith.constant 0 : index
    %c0_2 = arith.constant 0 : index
    %1 = vector.load %arg2[%c0_1, %c0_2] : memref<128x128xf32, #tpu.memory_space<vmem>>, vector<128x128xf32>
    %cst = arith.constant dense<0.000000e+00> : vector<8x128xf32>
    %2 = tpu.matmul %0, %1, %cst {dimension_numbers = #tpu.dot_dimension_numbers<[1], [0], [0], [1], [0, 0, 1, 1], [], []>} : vector<8x128xf32>, vector<128x128xf32>, vector<8x128xf32> -> vector<8x128xf32>
    %c0_3 = arith.constant 0 : index
    %c0_4 = arith.constant 0 : index
    %3 = vector.load %arg3[%c0_3, %c0_4] : memref<8x128xf32, #tpu.memory_space<vmem>>, vector<8x128xf32>
    tpu.vector_store %arg3[%c0_3, %c0_4], %2 {strides = array<i32>} : memref<8x128xf32, #tpu.memory_space<vmem>>, vector<8x128xf32>,
    return
  }
  func.func @transform_0(%arg0: i32) -> (i32, i32) {
    %c0_i32 = arith.constant 0 : i32
    %c0_i32_0 = arith.constant 0 : i32
    return %arg0, %c0_i32 : i32, i32
  }
  func.func @transform_1(%arg0: i32) -> (i32, i32) {
    %c0_i32 = arith.constant 0 : i32
    %c0_i32_0 = arith.constant 0 : i32
    %c0_i32_1 = arith.constant 0 : i32
    return %c0_i32, %c0_i32_0 : i32, i32
  }
  func.func @transform_2(%arg0: i32) -> (i32, i32) {
    %c0_i32 = arith.constant 0 : i32
    %c0_i32_0 = arith.constant 0 : i32
    return %arg0, %c0_i32 : i32, i32
  }
}

</mosaic_0001>

<bundles_post_ra>
// kernel: tpu_custom_call.1
= control target key start
LH: loop header
LB: loop body
LE: loop exit
PB: predicated region body
PF: predicated region fallthrough
CT: control target
= control target key end

     0   :  { %7 = vsyncpa [#allocation3], 0  ;;  %s364_s0 = inlined_call_operand.hbm [shape: f32[8,128], index: 0, kind: input, shape index: {}]   ;;  %s365_s1 = inlined_call_operand.hbm [shape: f32[128,128], index: 1, kind: input, shape index: {}]   ;;  %s366_s2 = inlined_call_operand.hbm [shape: f32[8,128], index: 2, kind: output, shape index: {}]  }
   0x1   :  { %8 = vsyncpa [#allocation6], 0 }
   0x2   :  { %9 = vsyncpa [#allocation4], 0  ;;  %s298_s9 = smov [#allocation2]   ;;  %s299_s11 = smov [#allocation5]  }
   0x3   :  { %s16_s10 = sshll.u32 %s298_s9, 4  ;;  %s25_s12 = sshll.u32 %s299_s11, 4  ;;  %s17_s10 = int_to_ptr.vmem [resolvable:$true] %s16_s10  ;;  %s321_s12 = int_to_ptr.vmem [resolvable:$true] %s25_s12 }
   0x4   :  { %s226_s15 = scalar_lea.hbm %s364_s0, 128 }
   0x5   :  { %p227_p0 = scmp.ne.s32.totalorder %s364_s0, %s226_s15  ;;  %p230_p1 = scmp.lt.u32.totalorder %s226_s15, %s364_s0 }
   0x7   :  { %p232_p2 = pnand %p230_p1, %p227_p0 }
   0x9   :  { %235 = shalt.err (!%p232_p2)
}
   0xa   :  { %s236_s20 = scalar_lea.vmem %s17_s10, 128  ;;  %p241_p4 = scmp.lt.s32.totalorder %s17_s10, %s17_s10 }
   0xb   :  { %p237_p3 = scmp.ne.s32.totalorder %s17_s10, %s236_s20  ;;  %p242_p5 = scmp.lt.s32.totalorder %s236_s20, %s236_s20 }
   0xd   :  { %p243_p6 = por %p242_p5, %p241_p4 }
   0xf   :  { %p244_p7 = pnand %p243_p6, %p237_p3 }
  0x11   :  { %247 = shalt.err (!%p244_p7)
}
  0x12   :  { %19 = dma.hbm_to_vmem [thread:$0]  %s364_s0, 128, %s17_s10, [#allocation3]  }
  0x13   :  { %s248_s25 = scalar_lea.hbm %s365_s1, 2048 }
  0x14   :  { %p249_p8 = scmp.ne.s32.totalorder %s365_s1, %s248_s25  ;;  %p252_p9 = scmp.lt.u32.totalorder %s248_s25, %s365_s1 }
  0x16   :  { %p254_p10 = pnand %p252_p9, %p249_p8 }
  0x18   :  { %257 = shalt.err (!%p254_p10)
}
  0x19   :  { %s258_s30 = scalar_lea.vmem %s321_s12, 2048  ;;  %p263_p12 = scmp.lt.s32.totalorder %s321_s12, %s321_s12 }
  0x1a   :  { %p259_p11 = scmp.ne.s32.totalorder %s321_s12, %s258_s30  ;;  %p264_p13 = scmp.lt.s32.totalorder %s258_s30, %s258_s30 }
  0x1c   :  { %p265_p0 = por %p264_p13, %p263_p12 }
  0x1e   :  { %p266_p1 = pnand %p265_p0, %p259_p11 }
  0x20   :  { %269 = shalt.err (!%p266_p1)
}
  0x21   :  { %s300_s0 = smov 128   ;;  %s301_s3 = smov 8  }
  0x22   :  { %31 = dma.hbm_to_vmem [thread:$0]  %s365_s1, 2048, %s321_s12, [#allocation6], %s300_s0, %s300_s0, %s301_s3  }
  0x23   :  { %292 = dma.done.wait [#allocation3], 128  }
  0x24   :  { %293 = vsyncadd [#allocation3], 4294967168 }
  0x25   :  { %294 = dma.done.wait [#allocation6], 2048  }
  0x26   :  { %295 = vsyncadd [#allocation6], 4294965248  ;;  %v302_v0 = vmov 0.0|0.0   ;;  %vm303_vm0 = vmmov 0   ;;  %v304_v1 = vmov 0.0   ;;  %v39_v2 = vld [vmem:[#allocation5] sm:$0xff] }
  0x27   :  { %194 = vmatprep.subr.bf16.mxu0 %v302_v0  ;;  %191 = vmatprep.mubr.msk.f32.mxu0 %vm303_vm0, %v304_v1  ;;  %v40_v3 = vld [vmem:[#allocation5 + $0x8] sm:$0xff]  ;;  %v41_v4 = vld [vmem:[#allocation5 + $0x10] sm:$0xff]  ;;  %v42_v6 = vld [vmem:[#allocation5 + $0x18] sm:$0xff]  ;;  %s305_s1 = smov [#allocation7]  }
  0x28   :  { %v195_v5 = vpack.c.bf16 %v40_v3, %v39_v2  ;;  %v198_v7 = vpack.c.bf16 %v42_v6, %v41_v4  ;;  %v43_v8 = vld [vmem:[#allocation5 + $0x20] sm:$0xff]  ;;  %v44_v9 = vld [vmem:[#allocation5 + $0x28] sm:$0xff]  ;;  %v45_v11 = vld [vmem:[#allocation5 + $0x30] sm:$0xff]  ;;  %s132_s6 = sshll.u32 %s305_s1, 4  ;;  %s133_s6 = int_to_ptr.vmem [resolvable:$true] %s132_s6 }
  0x29   :  { %v201_v10 = vpack.c.bf16 %v44_v9, %v43_v8  ;;  %v46_v12 = vld [vmem:[#allocation5 + $0x38] sm:$0xff]  ;;  %v47_v14 = vld [vmem:[#allocation5 + $0x40] sm:$0xff]  ;;  %v48_v15 = vld [vmem:[#allocation5 + $0x48] sm:$0xff]  ;;  %s270_s7 = scalar_lea.vmem %s133_s6, 128  ;;  %p275_p3 = scmp.lt.s32.totalorder %s133_s6, %s133_s6 }
  0x2a   :  { %196 = vmatpush3.bf16.msra.mxu0 %v195_v5  ;;  %v204_v13 = vpack.c.bf16 %v46_v12, %v45_v11  ;;  %v207_v16 = vpack.c.bf16 %v48_v15, %v47_v14  ;;  %v49_v17 = vld [vmem:[#allocation5 + $0x50] sm:$0xff]  ;;  %v50_v18 = vld [vmem:[#allocation5 + $0x58] sm:$0xff]  ;;  %v51_v20 = vld [vmem:[#allocation5 + $0x60] sm:$0xff]  ;;  %p271_p2 = scmp.ne.s32.totalorder %s133_s6, %s270_s7  ;;  %p276_p4 = scmp.lt.s32.totalorder %s270_s7, %s270_s7 }
  0x2b   :  { %197 = vmatprep.subr.bf16.mxu0 %v302_v0  ;;  %v210_v19 = vpack.c.bf16 %v50_v18, %v49_v17  ;;  %v52_v21 = vld [vmem:[#allocation5 + $0x68] sm:$0xff]  ;;  %v53_v23 = vld [vmem:[#allocation5 + $0x70] sm:$0xff]  ;;  %v54_v24 = vld [vmem:[#allocation5 + $0x78] sm:$0xff] }
  0x2c   :  { %v213_v22 = vpack.c.bf16 %v52_v21, %v51_v20  ;;  %v216_v25 = vpack.c.bf16 %v54_v24, %v53_v23  ;;  %v38_v26 = vld [vmem:[#allocation2] sm:$0xff]  ;;  %p277_p5 = por %p276_p4, %p275_p3 }
  0x2e   :  { %199 = vmatpush3.bf16.msra.mxu0 %v198_v7  ;;  %p278_p6 = pnand %p277_p5, %p271_p2 }
  0x2f   :  { %200 = vmatprep.subr.bf16.mxu0 %v302_v0 }
  0x32   :  { %202 = vmatpush3.bf16.msra.mxu0 %v201_v10 }
  0x33   :  { %203 = vmatprep.subr.bf16.mxu0 %v302_v0 }
  0x36   :  { %205 = vmatpush3.bf16.msra.mxu0 %v204_v13 }
  0x37   :  { %206 = vmatprep.subr.bf16.mxu0 %v302_v0 }
  0x3a   :  { %208 = vmatpush3.bf16.msra.mxu0 %v207_v16 }
  0x3b   :  { %209 = vmatprep.subr.bf16.mxu0 %v302_v0 }
  0x3e   :  { %211 = vmatpush3.bf16.msra.mxu0 %v210_v19 }
  0x3f   :  { %212 = vmatprep.subr.bf16.mxu0 %v302_v0 }
  0x42   :  { %214 = vmatpush3.bf16.msra.mxu0 %v213_v22 }
  0x43   :  { %215 = vmatprep.subr.bf16.mxu0 %v302_v0 }
  0x46   :  { %217 = vmatpush3.bf16.msra.mxu0 %v216_v25 }
  0x49   :  { %192 = vmatmul.mubr.f32.vlgmr.msra.gmra.mrb[0].mxu0 %v38_v26 }
 0x11c   :  { %v121_v27 = vpop.f32.mrb[0].mxu0 }
 0x11d   :  { %125 = vst [vmem:[#allocation7] sm:$0xff] %v121_v27  ;;  %v193_v28 = vpop.f32.mrb[1].mxu0 }
 0x11e   :  { %281 = shalt.err (!%p278_p6)
}
 0x11f   :  { %s282_s10 = scalar_lea.hbm %s366_s2, 128 }
 0x120   :  { %p283_p7 = scmp.ne.s32.totalorder %s366_s2, %s282_s10  ;;  %p286_p8 = scmp.lt.u32.totalorder %s282_s10, %s366_s2 }
 0x122   :  { %p288_p9 = pnand %p286_p8, %p283_p7 }
 0x124   :  { %291 = shalt.err (!%p288_p9)
}
 0x125   :  { %135 = dma.vmem_to_hbm [thread:$0]  %s133_s6, 128, %s366_s2, [#allocation4]  }
 0x126   :  { %296 = dma.done.wait [#allocation4], 128  }
 0x127   :  { %297 = vsyncadd [#allocation4], 4294967168 }
 0x128   :  { %139 = vsyncpa [#allocation3], 1 }
 0x129   :  { %140 = vsyncpa [#allocation6], 1 }
 0x12a   :  { %141 = vsyncpa [#allocation4], 1 }

</bundles_post_ra>
